<compile_context>
chip_gen: v6e
topology: v6e:2x2x1
jax: 0.10.0
libtpu: 0.0.40
codegen_flags: <defaults>
</compile_context>

<pallas_src>
import math

import jax
import jax.numpy as jnp
from jax import lax
from jax.experimental import pallas as pl
from jax.experimental.pallas import tpu as pltpu


def make_attn_dropout_kernel(B, Lq, Lk, D, Dv, dropout_p=0.5):
    # inv_scale_factor = sqrt(sqrt(D_q) / sqrt(D_k)); static at trace time.
    inv_scale = float(math.sqrt(math.sqrt(D) / math.sqrt(D)))
    q_prescale = 1.0 / inv_scale          # folded into q (identity here: == 1.0)
    keep_scale = 1.0 / (1.0 - dropout_p)  # dropout rescale of kept entries

    def kernel(q_ref, k_ref, v_ref, mask_ref, o_ref):
        q = q_ref[0].astype(jnp.float32)        # (Lq, D)
        k = k_ref[0].astype(jnp.float32)        # (Lk, D)
        v = v_ref[0].astype(jnp.float32)        # (Lk, Dv)
        mask = mask_ref[0].astype(jnp.float32)  # (Lq, Lk), values in {0, 1}

        # Fold the attention scale into q (skip when statically a no-op).
        if abs(q_prescale - 1.0) > 1e-12:
            q = q * jnp.float32(q_prescale)

        # scores = q @ k^T without materializing a transpose: contract axis 1
        # of q against axis 1 of k on the MXU.
        s = lax.dot_general(
            q, k,
            dimension_numbers=(((1,), (1,)), ((), ())),
            preferred_element_type=jnp.float32,
        )                                                     # (Lq, Lk)

        # Numerically-stable softmax, normalization fused with dropout scale:
        # divide only the (Lq, 1) row-sum column, not the (Lq, Lk) matrix.
        m = jnp.max(s, axis=-1, keepdims=True)                # (Lq, 1)
        e = jnp.exp(s - m)                                    # (Lq, Lk)
        row_sum = jnp.sum(e, axis=-1, keepdims=True)          # (Lq, 1)
        inv = jnp.float32(keep_scale) / row_sum               # (Lq, 1)

        # Dropout: mask is {0,1}; kept entries are scaled by keep_scale via inv.
        p_drop = e * mask * inv                               # (Lq, Lk)

        # output = dropout(softmax(qk)) @ value
        o_ref[0] = jnp.dot(
            p_drop, v, preferred_element_type=jnp.float32
        ).astype(o_ref.dtype)

    return pl.pallas_call(
        kernel,
        out_shape=jax.ShapeDtypeStruct((B, Lq, Dv), jnp.float32),
        grid=(B,),
        in_specs=[
            pl.BlockSpec((1, Lq, D), lambda b: (b, 0, 0)),
            pl.BlockSpec((1, Lk, D), lambda b: (b, 0, 0)),
            pl.BlockSpec((1, Lk, Dv), lambda b: (b, 0, 0)),
            pl.BlockSpec((1, Lq, Lk), lambda b: (b, 0, 0)),
        ],
        out_specs=pl.BlockSpec((1, Lq, Dv), lambda b: (b, 0, 0)),
        compiler_params=pltpu.CompilerParams(
            # Batch steps are fully independent -> shard across TCs on v7x.
            dimension_semantics=("parallel",),
        ),
    )


def model_forward(query, key, value, seed=0, dropout_p=0.5):
    B, Lq, D = query.shape
    _, Lk, _ = key.shape
    Dv = value.shape[-1]

    # Dropout keep-mask generated outside the kernel (deterministic from seed).
    # Note: not bit-identical to PyTorch's RNG (expected), but same semantics.
    mask = jax.random.bernoulli(
        jax.random.PRNGKey(seed), p=1.0 - dropout_p, shape=(B, Lq, Lk)
    ).astype(jnp.float32)

    fn = make_attn_dropout_kernel(B, Lq, Lk, D, Dv, dropout_p=dropout_p)
    # NOTE: PyTorch's `dropout_qk.mm(value)` is only valid for 2-D tensors;
    # with batch=1 the clear intent is the batched matmul, computed here.
    return fn(query, key, value, mask)


if __name__ == "__main__":
    rng = jax.random.PRNGKey(0)
    kq, kk, kv = jax.random.split(rng, 3)

    # Shapes taken directly from the reference script.
    query = jax.random.normal(kq, (1, 2, 5), dtype=jnp.float32)
    key = jax.random.normal(kk, (1, 4, 5), dtype=jnp.float32)
    value = jax.random.normal(kv, (1, 4, 7), dtype=jnp.float32)

    out = model_forward(query, key, value, seed=0)
    out = jax.block_until_ready(out)

    assert out.shape == (1, 2, 7), out.shape
    assert bool(jnp.all(jnp.isfinite(out))), "non-finite output"
    print("KERNEL_OK")
</pallas_src>

<mosaic_0001>
module attributes {stable_mosaic.version = 11 : i64} {
  func.func @kernel(%arg0: i32, %arg1: memref<1x2x5xf32, #tpu.memory_space<vmem>>, %arg2: memref<1x4x5xf32, #tpu.memory_space<vmem>>, %arg3: memref<1x4x7xf32, #tpu.memory_space<vmem>>, %arg4: memref<1x2x4xf32, #tpu.memory_space<vmem>>, %arg5: memref<1x2x7xf32, #tpu.memory_space<vmem>>) attributes {dimension_semantics = [#tpu.dimension_semantics<parallel>], iteration_bounds = array<i64: 1>, scalar_prefetch = 0 : i64, scratch_operands = 0 : i64, tpu.core_type = #tpu.core_type<tc>, window_params = [{transform_indices = @transform_0, window_bounds = array<i64: 1, 2, 5>}, {transform_indices = @transform_1, window_bounds = array<i64: 1, 4, 5>}, {transform_indices = @transform_2, window_bounds = array<i64: 1, 4, 7>}, {transform_indices = @transform_3, window_bounds = array<i64: 1, 2, 4>}, {transform_indices = @transform_4, window_bounds = array<i64: 1, 2, 7>}]} {
    %c0 = arith.constant 0 : index
    %c0_0 = arith.constant 0 : index
    %c0_1 = arith.constant 0 : index
    %0 = vector.load %arg1[%c0, %c0_0, %c0_1] : memref<1x2x5xf32, #tpu.memory_space<vmem>>, vector<1x2x5xf32>
    %1 = vector.shape_cast %0 : vector<1x2x5xf32> to vector<2x5xf32>
    %c0_2 = arith.constant 0 : index
    %c0_3 = arith.constant 0 : index
    %c0_4 = arith.constant 0 : index
    %2 = vector.load %arg2[%c0_2, %c0_3, %c0_4] : memref<1x4x5xf32, #tpu.memory_space<vmem>>, vector<1x4x5xf32>
    %3 = vector.shape_cast %2 : vector<1x4x5xf32> to vector<4x5xf32>
    %c0_5 = arith.constant 0 : index
    %c0_6 = arith.constant 0 : index
    %c0_7 = arith.constant 0 : index
    %4 = vector.load %arg3[%c0_5, %c0_6, %c0_7] : memref<1x4x7xf32, #tpu.memory_space<vmem>>, vector<1x4x7xf32>
    %5 = vector.shape_cast %4 : vector<1x4x7xf32> to vector<4x7xf32>
    %c0_8 = arith.constant 0 : index
    %c0_9 = arith.constant 0 : index
    %c0_10 = arith.constant 0 : index
    %6 = vector.load %arg4[%c0_8, %c0_9, %c0_10] : memref<1x2x4xf32, #tpu.memory_space<vmem>>, vector<1x2x4xf32>
    %7 = vector.shape_cast %6 : vector<1x2x4xf32> to vector<2x4xf32>
    %cst = arith.constant dense<0.000000e+00> : vector<2x4xf32>
    %8 = tpu.matmul %1, %3, %cst {dimension_numbers = #tpu.dot_dimension_numbers<[1], [1], [0], [0], [0, 0, 1, 0], [], []>} : vector<2x5xf32>, vector<4x5xf32>, vector<2x4xf32> -> vector<2x4xf32>
    %cst_11 = arith.constant dense<0xFF800000> : vector<2xf32>
    %9 = vector.multi_reduction <maximumf>, %8, %cst_11 [1] : vector<2x4xf32> to vector<2xf32>
    %10 = vector.shape_cast %9 : vector<2xf32> to vector<2x1xf32>
    %11 = vector.broadcast %10 : vector<2x1xf32> to vector<2x4xf32>
    %12 = arith.subf %8, %11 : vector<2x4xf32>
    %13 = math.exp %12 : vector<2x4xf32>
    %cst_12 = arith.constant dense<0.000000e+00> : vector<2xf32>
    %14 = vector.multi_reduction <add>, %13, %cst_12 [1] : vector<2x4xf32> to vector<2xf32>
    %15 = vector.shape_cast %14 : vector<2xf32> to vector<2x1xf32>
    %cst_13 = arith.constant 2.000000e+00 : f32
    %16 = vector.broadcast %cst_13 : f32 to vector<2x1xf32>
    %17 = arith.divf %16, %15 : vector<2x1xf32>
    %18 = arith.mulf %13, %7 : vector<2x4xf32>
    %19 = vector.broadcast %17 : vector<2x1xf32> to vector<2x4xf32>
    %20 = arith.mulf %18, %19 : vector<2x4xf32>
    %cst_14 = arith.constant dense<0.000000e+00> : vector<2x7xf32>
    %21 = tpu.matmul %20, %5, %cst_14 {dimension_numbers = #tpu.dot_dimension_numbers<[1], [0], [0], [1], [0, 0, 1, 1], [], []>} : vector<2x4xf32>, vector<4x7xf32>, vector<2x7xf32> -> vector<2x7xf32>
    %c0_15 = arith.constant 0 : index
    %c0_16 = arith.constant 0 : index
    %c0_17 = arith.constant 0 : index
    %22 = vector.load %arg5[%c0_15, %c0_16, %c0_17] : memref<1x2x7xf32, #tpu.memory_space<vmem>>, vector<1x2x7xf32>
    %23 = vector.shape_cast %22 : vector<1x2x7xf32> to vector<2x7xf32>
    %24 = vector.shape_cast %21 : vector<2x7xf32> to vector<1x2x7xf32>
    tpu.vector_store %arg5[%c0_15, %c0_16, %c0_17], %24 {strides = array<i32>} : memref<1x2x7xf32, #tpu.memory_space<vmem>>, vector<1x2x7xf32>,
    return
  }
  func.func @transform_0(%arg0: i32) -> (i32, i32, i32) {
    %c0_i32 = arith.constant 0 : i32
    %c0_i32_0 = arith.constant 0 : i32
    %c0_i32_1 = arith.constant 0 : i32
    return %arg0, %c0_i32, %c0_i32_0 : i32, i32, i32
  }
  func.func @transform_1(%arg0: i32) -> (i32, i32, i32) {
    %c0_i32 = arith.constant 0 : i32
    %c0_i32_0 = arith.constant 0 : i32
    %c0_i32_1 = arith.constant 0 : i32
    return %arg0, %c0_i32, %c0_i32_0 : i32, i32, i32
  }
  func.func @transform_2(%arg0: i32) -> (i32, i32, i32) {
    %c0_i32 = arith.constant 0 : i32
    %c0_i32_0 = arith.constant 0 : i32
    %c0_i32_1 = arith.constant 0 : i32
    return %arg0, %c0_i32, %c0_i32_0 : i32, i32, i32
  }
  func.func @transform_3(%arg0: i32) -> (i32, i32, i32) {
    %c0_i32 = arith.constant 0 : i32
    %c0_i32_0 = arith.constant 0 : i32
    %c0_i32_1 = arith.constant 0 : i32
    return %arg0, %c0_i32, %c0_i32_0 : i32, i32, i32
  }
  func.func @transform_4(%arg0: i32) -> (i32, i32, i32) {
    %c0_i32 = arith.constant 0 : i32
    %c0_i32_0 = arith.constant 0 : i32
    %c0_i32_1 = arith.constant 0 : i32
    return %arg0, %c0_i32, %c0_i32_0 : i32, i32, i32
  }
}

</mosaic_0001>

<bundles_post_ra>
// kernel: tpu_custom_call.1
= control target key start
LH: loop header
LB: loop body
LE: loop exit
PB: predicated region body
PF: predicated region fallthrough
CT: control target
= control target key end

     0   :  { %9 = vsyncpa [#allocation3], 0  ;;  %s404_s0 = inlined_call_operand.hbm [shape: f32[1,2,5], index: 0, kind: input, shape index: {}]   ;;  %s405_s1 = inlined_call_operand.hbm [shape: f32[1,4,5], index: 1, kind: input, shape index: {}]   ;;  %s406_s2 = inlined_call_operand.hbm [shape: f32[1,4,7], index: 2, kind: input, shape index: {}]   ;;  %s407_s3 = inlined_call_operand.vmem [shape: f32[1,2,4], index: 3, kind: input, shape index: {}]   ;;  %s408_s4 = inlined_call_operand.hbm [shape: f32[1,2,7], index: 4, kind: output, shape index: {}]  }
   0x1   :  { %10 = vsyncpa [#allocation6], 0 }
   0x2   :  { %11 = vsyncpa [#allocation4], 0  ;;  %s358_s15 = smov [#allocation5]   ;;  %s359_s17 = smov [#allocation2]  }
   0x3   :  { %s28_s16 = sshll.u32 %s358_s15, 4  ;;  %s18_s18 = sshll.u32 %s359_s17, 4  ;;  %s29_s16 = int_to_ptr.vmem [resolvable:$true] %s28_s16  ;;  %s19_s18 = int_to_ptr.vmem [resolvable:$true] %s18_s18 }
   0x4   :  { %s280_s19 = scalar_lea.vmem %s29_s16, 64  ;;  %p285_p1 = scmp.lt.s32.totalorder %s29_s16, %s29_s16 }
   0x5   :  { %p281_p0 = scmp.ne.s32.totalorder %s29_s16, %s280_s19  ;;  %p286_p2 = scmp.lt.s32.totalorder %s280_s19, %s280_s19 }
   0x7   :  { %p287_p3 = por %p286_p2, %p285_p1 }
   0x9   :  { %p288_p4 = pnand %p287_p3, %p281_p0 }
   0xb   :  { %291 = shalt.err (!%p288_p4)
}
   0xc   :  { %31 = dma.hbm_to_vmem [thread:$0]  %s405_s1, 64, %s29_s16, [#allocation6]  }
   0xd   :  { %s300_s22 = scalar_lea.vmem %s19_s18, 32  ;;  %p305_p6 = scmp.lt.s32.totalorder %s19_s18, %s19_s18 }
   0xe   :  { %p301_p5 = scmp.ne.s32.totalorder %s19_s18, %s300_s22  ;;  %p306_p7 = scmp.lt.s32.totalorder %s300_s22, %s300_s22 }
  0x10   :  { %p307_p8 = por %p306_p7, %p305_p6 }
  0x12   :  { %p308_p9 = pnand %p307_p8, %p301_p5 }
  0x14   :  { %311 = shalt.err (!%p308_p9)
}
  0x15   :  { %21 = dma.hbm_to_vmem [thread:$0]  %s404_s0, 32, %s19_s18, [#allocation3]  }
  0x16   :  { %s360_s25 = smov [#allocation7]  }
  0x17   :  { %s38_s26 = sshll.u32 %s360_s25, 4  ;;  %s39_s26 = int_to_ptr.vmem [resolvable:$true] %s38_s26 }
  0x18   :  { %s320_s27 = scalar_lea.vmem %s39_s26, 64  ;;  %p325_p11 = scmp.lt.s32.totalorder %s39_s26, %s39_s26 }
  0x19   :  { %p321_p10 = scmp.ne.s32.totalorder %s39_s26, %s320_s27  ;;  %p326_p12 = scmp.lt.s32.totalorder %s320_s27, %s320_s27 }
  0x1b   :  { %p327_p13 = por %p326_p12, %p325_p11 }
  0x1d   :  { %p328_p0 = pnand %p327_p13, %p321_p10 }
  0x1f   :  { %331 = shalt.err (!%p328_p0)
}
  0x20   :  { %41 = dma.hbm_to_vmem [thread:$0]  %s406_s2, 64, %s39_s26, [#allocation6]  }
  0x21   :  { %352 = dma.done.wait [#allocation3], 32  }
  0x22   :  { %353 = vsyncadd [#allocation3], 4294967264 }
  0x23   :  { %354 = dma.done.wait [#allocation6], 128  }
  0x24   :  { %355 = vsyncadd [#allocation6], 4294967168  ;;  %v361_v0 = vmov 0.0   ;;  %vm362_vm0 = vmmov 0   ;;  %vm57_vm1 = vcmask 39936   ;;  %vm134_vm2 = vcmask 25600  }
  0x25   :  { %252 = vmatprep.subr.mxu0 %v361_v0  ;;  %254 = vmatprep.mubr.msk.f32.mxu0 %vm362_vm0, %v361_v0  ;;  %v54_v1 = vld [vmem:[#allocation5] sm:$0xf]  ;;  %v53_v2 = vld [vmem:[#allocation2] sm:$0x3]  ;;  %v55_v11 = vld [vmem:[#allocation7] sm:$0xf] }
  0x26   :  { %257 = vmatprep.subr.mxu1 %v361_v0  ;;  %259 = vmatprep.mubr.msk.f32.mxu1 %vm362_vm0, %v361_v0  ;;  %vm152_vm3 = vcmask 1043456   ;;  %v56_v13 = vld [vmem:[%s407_s3] sm:$0x3]  ;;  %vm148_vm4 = vcmask 31744   ;;  %s363_s29 = smov [#allocation8]   ;;  %vm226_vm5 = vcmask 50176  }
  0x27   :  { %253 = vmatpush3.xpose.msk.msra.mxu0 %vm57_vm1, %v54_v1  ;;  %258 = vmatpush3.msk.msra.mxu1 %vm152_vm3, %v55_v11  ;;  %s234_s30 = sshll.u32 %s363_s29, 4  ;;  %s235_s30 = int_to_ptr.vmem [resolvable:$true] %s234_s30 }
  0x28   :  { %s332_s5 = scalar_lea.vmem %s235_s30, 32  ;;  %p337_p2 = scmp.lt.s32.totalorder %s235_s30, %s235_s30 }
  0x29   :  { %p333_p1 = scmp.ne.s32.totalorder %s235_s30, %s332_s5  ;;  %p338_p3 = scmp.lt.s32.totalorder %s332_s5, %s332_s5 }
  0x2a   :  { %255 = vmatmul.mubr.msk.f32.vlgmr.msra.gmra.mxu0 %vm57_vm1, %v53_v2 }
  0x2b   :  { %p339_p4 = por %p338_p3, %p337_p2 }
  0x2d   :  { %p340_p5 = pnand %p339_p4, %p333_p1 }
  0xea   :  { %v130_v3 = vpop.f32.mrf.mxu0 }
  0xeb   :  { %v135_v4 = vsel %vm134_vm2, %v130_v3, -inf }
  0xec   :  { %136 = vmax.xlane.f32.xlu0 %v135_v4  ;;  %v256_v5 = vpop.f32.mrf.mxu0 }
 0x175   :  { %v137_v6 = vpop.xlane.xlu0 %136 }
 0x176   :  { %v138_v7 = vsub.f32 %v130_v3, %v137_v6 }
 0x178   :  { %v139_v8 = vmul.f32 1.442695, %v138_v7 }
 0x17a   :  { %268 = vpow2.f32 %v139_v8 }
 0x187   :  { %v269_v9 = vpop.eup %268 }
 0x188   :  { %v141_v10 = vsel %vm134_vm2, %v269_v9, 0.0  ;;  %v146_v15 = vmul.f32 %v269_v9, %v56_v13 }
 0x189   :  { %142 = vadd.xlane.f32.xlu0 %v141_v10 }
 0x212   :  { %v143_v12 = vpop.xlane.xlu0 %142 }
 0x213   :  { %270 = vrcp.f32 %v143_v12 }
 0x220   :  { %v271_v14 = vpop.eup %270 }
 0x221   :  { %v145_v16 = vmul.f32 2.0, %v271_v14 }
 0x223   :  { %v147_v17 = vmul.f32 %v146_v15, %v145_v16 }
 0x225   :  { %260 = vmatmul.mubr.msk.f32.vlgmr.msra.gmra.mxu1 %vm148_vm4, %v147_v17 }
 0x2e5   :  { %v222_v18 = vpop.f32.mrf.mxu1 }
 0x2e6   :  { %227 = vst.msk [vmem:[#allocation8] sm:$0x3] %vm226_vm5, %v222_v18 }
 0x2e7   :  { %v261_v19 = vpop.f32.mrf.mxu1 }
 0x2e8   :  { %343 = shalt.err (!%p340_p5)
}
 0x2e9   :  { %237 = dma.vmem_to_hbm [thread:$0]  %s235_s30, 32, %s408_s4, [#allocation4]  }
 0x2ea   :  { %356 = dma.done.wait [#allocation4], 32  }
 0x2eb   :  { %357 = vsyncadd [#allocation4], 4294967264 }
 0x2ec   :  { %241 = vsyncpa [#allocation3], 1 }
 0x2ed   :  { %242 = vsyncpa [#allocation6], 1 }
 0x2ee   :  { %243 = vsyncpa [#allocation4], 1 }

</bundles_post_ra>
